<compile_context>
chip_gen: v7x
topology: tpu7x:2x2x1
jax: 0.10.0
libtpu: 0.0.40
codegen_flags: <defaults>
</compile_context>

<pallas_src>
import jax
import jax.numpy as jnp
from jax.experimental import pallas as pl
from jax.experimental.pallas import tpu as pltpu


def gu_kernel(u_ref, a_ref, wu_ref, wa_ref, b_ref, o_ref):
    u = u_ref[...]                                   # caller dtype straight into the MXU
    a = a_ref[...]
    z = (jnp.dot(u, wu_ref[...], preferred_element_type=jnp.float32)
         + jnp.dot(a, wa_ref[...], preferred_element_type=jnp.float32)
         + b_ref[...])                               # f32 accumulate + f32 bias
    if o_ref.dtype == jnp.float32:
        g = jax.nn.sigmoid(z)                        # exact path for f32 outputs
    else:
        # EUP-only sigmoid (exp + approx reciprocal); error is below bf16 rounding.
        g = pl.reciprocal(1.0 + jnp.exp(-z), approx=True)
    o_ref[...] = (a + g * (u - a)).astype(o_ref.dtype)


def _round_up(x, m):
    return ((x + m - 1) // m) * m


def _vmem_capacity_bytes():
    """Physical VMEM of the local TPU generation; conservative fallback (v7x size)."""
    try:
        return int(pltpu.get_tpu_info().vmem_capacity_bytes)
    except Exception:
        return 64 << 20


_TILE_TARGET_BYTES = 4 << 20     # per-input-stream tile target (amortizes step overhead on v7x)


def simple_gu_layer(u_i, aggr_u_i, weight, bias, *, tile_rows=None):
    """u_i, aggr_u_i: (N, D). weight: (D, 2D) (PyTorch nn.Linear layout). bias: (D,).

    Compute/HBM dtype follows u_i.dtype (pass bf16 inputs to halve HBM traffic);
    matmul accumulation and the gate are always f32.
    """
    N, D = u_i.shape
    assert aggr_u_i.shape == (N, D)
    assert weight.shape == (D, 2 * D) and bias.shape == (D,)
    in_dtype = u_i.dtype
    itemsize = jnp.dtype(in_dtype).itemsize
    sub = {4: 8, 2: 16, 1: 32}.get(itemsize, 8)      # sublane granule per dtype

    # Split the Linear: cat(u, a) @ W.T == u @ Wu + a @ Wa; weights in compute dtype.
    w_t = weight.T.astype(in_dtype)                  # (2D, D)
    w_u, w_a = w_t[:D, :], w_t[D:, :]                # (D, D) each

    # Lane-dense packing: fold r tokens into the lane axis when D < 128.
    # TODO(synk): lane_d=256 would fill the v6e/v7x 256-wide MXU natively, but the
    # kernel is HBM-bound so that is second order; 128 also matches v5e's MXU.
    r = 128 // D if (D < 128 and 128 % D == 0) else 1
    lane_d = r * D
    if r > 1:
        eye_r = jnp.eye(r, dtype=w_u.dtype)
        w_u = jnp.kron(eye_r, w_u)                   # (r*D, r*D) block-diagonal
        w_a = jnp.kron(eye_r, w_a)
        b_vec = jnp.tile(bias, r)
    else:
        b_vec = bias
    b2d = b_vec.reshape(1, lane_d).astype(jnp.float32)
    w_itemsize = jnp.dtype(w_u.dtype).itemsize

    # Minimal row padding: to a multiple of r for the lane fold, plus (tiny inputs
    # only) up to one sublane granule of packed rows.  Realistic N takes the
    # pad-free fast path; the ragged final row block is handled by the grid
    # (cdiv), not by padding the token streams in HBM.
    pad_rows = (-N) % r
    packed_rows = (N + pad_rows) // r
    if packed_rows < sub:
        pad_rows += (sub - packed_rows) * r
        packed_rows = sub
    if pad_rows:
        u_in = jnp.pad(u_i, ((0, pad_rows), (0, 0)))
        a_in = jnp.pad(aggr_u_i, ((0, pad_rows), (0, 0)))
    else:
        u_in, a_in = u_i, aggr_u_i
    if r > 1:
        u_in = u_in.reshape(packed_rows, lane_d)     # row-major fold: exact mapping
        a_in = a_in.reshape(packed_rows, lane_d)

    # VMEM footprint for a candidate row tile: double-buffered streams, resident
    # weights counted at 2 buffers, bias, plus the f32 z/g/blend temporaries.
    def est_vmem(tr):
        return (2 * 2 * tr * lane_d * itemsize       # u, a tiles
                + 2 * tr * lane_d * itemsize         # out tile
                + 2 * 2 * lane_d * lane_d * w_itemsize
                + 2 * 8 * lane_d * 4                 # bias
                + 3 * tr * lane_d * 4)               # f32 temporaries

    vmem_budget = (_vmem_capacity_bytes() * 3) // 4

    if tile_rows is None:
        # Dtype-aware byte target so each grid step amortizes the ~0.35us overhead.
        tile_rows = max(sub, (_TILE_TARGET_BYTES // max(1, lane_d * itemsize)) // sub * sub)
        if packed_rows > sub:
            # >= 2 grid steps so dimension_semantics=("parallel",) can shard across
            # v7x's two TensorCores.
            tile_rows = min(tile_rows, _round_up(pl.cdiv(packed_rows, 2), sub))
        while tile_rows > sub and est_vmem(tile_rows) > vmem_budget:
            tile_rows = max(sub, (tile_rows // 2) // sub * sub)
    tile_rows = max(sub, min((tile_rows // sub) * sub, _round_up(packed_rows, sub)))
    grid = (pl.cdiv(packed_rows, tile_rows),)

    vmem_limit = int(min(max(est_vmem(tile_rows) * 3 // 2, 32 << 20), vmem_budget))

    cost = pl.CostEstimate(
        flops=int(4 * packed_rows * lane_d * lane_d + 6 * packed_rows * lane_d),
        transcendentals=int(packed_rows * lane_d),
        bytes_accessed=int(3 * packed_rows * lane_d * itemsize
                           + 2 * lane_d * lane_d * w_itemsize + lane_d * 4),
    )

    row_spec = pl.BlockSpec((tile_rows, lane_d), lambda i: (i, 0))
    out_p = pl.pallas_call(
        gu_kernel,
        out_shape=jax.ShapeDtypeStruct((packed_rows, lane_d), in_dtype),
        grid_spec=pltpu.PrefetchScalarGridSpec(
            num_scalar_prefetch=0,
            grid=grid,
            in_specs=[
                row_spec,                                          # u tile
                row_spec,                                          # a tile
                pl.BlockSpec((lane_d, lane_d), lambda i: (0, 0)),  # Wu (resident)
                pl.BlockSpec((lane_d, lane_d), lambda i: (0, 0)),  # Wa (resident)
                pl.BlockSpec((1, lane_d), lambda i: (0, 0)),       # bias (resident)
            ],
            out_specs=row_spec,
        ),
        compiler_params=pltpu.CompilerParams(
            dimension_semantics=("parallel",),
            vmem_limit_bytes=vmem_limit),
        cost_estimate=cost,
    )(u_in, a_in, w_u, w_a, b2d)

    out = out_p.reshape(-1, D) if r > 1 else out_p
    return out[:N] if pad_rows else out


def simple_gu_layer_ref(u_i, aggr_u_i, weight, bias):
    concat = jnp.concatenate([u_i, aggr_u_i], axis=-1)
    g = jax.nn.sigmoid(concat @ weight.T + bias)
    return g * u_i + (1.0 - g) * aggr_u_i


if __name__ == "__main__":
    key = jax.random.PRNGKey(0)
    N, d_model = 8, 32                    # seq=8, hidden=32

    k_u, k_a, k_w, k_b = jax.random.split(key, 4)
    u_i = jax.random.normal(k_u, (N, d_model), dtype=jnp.float32)
    aggr_u_i = jax.random.normal(k_a, (N, d_model), dtype=jnp.float32)

    # Deterministic nn.Linear(2*d_model, d_model)-style init: U(-1/sqrt(fan_in), +)
    bound = 1.0 / jnp.sqrt(2.0 * d_model)
    weight = jax.random.uniform(k_w, (d_model, 2 * d_model),
                                minval=-bound, maxval=bound, dtype=jnp.float32)
    bias = jax.random.uniform(k_b, (d_model,),
                              minval=-bound, maxval=bound, dtype=jnp.float32)

    ref = simple_gu_layer_ref(u_i, aggr_u_i, weight, bias)

    # 1) f32 path (tiny input -> padded layout path), exact tolerance.
    out_f32 = jax.block_until_ready(simple_gu_layer(u_i, aggr_u_i, weight, bias))
    assert out_f32.shape == (N, d_model)
    assert jnp.allclose(out_f32, ref, atol=1e-5, rtol=1e-5), "f32 mismatch vs reference"

    # 2) bf16 path (halved HBM traffic + approx-reciprocal sigmoid), bf16 accuracy.
    out_bf16 = jax.block_until_ready(
        simple_gu_layer(u_i.astype(jnp.bfloat16), aggr_u_i.astype(jnp.bfloat16),
                        weight, bias))
    assert out_bf16.dtype == jnp.bfloat16
    assert jnp.allclose(out_bf16.astype(jnp.float32), ref, atol=4e-2, rtol=4e-2), \
        "bf16 mismatch vs reference"

    # 3) larger f32 run: pad-free fast path + multi-step grid with a ragged last block.
    N2 = 300
    k_u2, k_a2 = jax.random.split(jax.random.PRNGKey(1), 2)
    u2 = jax.random.normal(k_u2, (N2, d_model), dtype=jnp.float32)
    a2 = jax.random.normal(k_a2, (N2, d_model), dtype=jnp.float32)
    out2 = jax.block_until_ready(simple_gu_layer(u2, a2, weight, bias))
    ref2 = simple_gu_layer_ref(u2, a2, weight, bias)
    assert out2.shape == (N2, d_model)
    assert jnp.allclose(out2, ref2, atol=2e-5, rtol=2e-5), "large-N mismatch vs reference"

    print("KERNEL_OK")
</pallas_src>

<mosaic_0001>
module attributes {stable_mosaic.version = 11 : i64} {
  func.func @gu_kernel(%arg0: i32, %arg1: memref<8x128xf32, #tpu.memory_space<vmem>>, %arg2: memref<8x128xf32, #tpu.memory_space<vmem>>, %arg3: memref<128x128xf32, #tpu.memory_space<vmem>>, %arg4: memref<128x128xf32, #tpu.memory_space<vmem>>, %arg5: memref<1x128xf32, #tpu.memory_space<vmem>>, %arg6: memref<8x128xf32, #tpu.memory_space<vmem>>) attributes {dimension_semantics = [#tpu.dimension_semantics<parallel>], iteration_bounds = array<i64: 1>, scalar_prefetch = 0 : i64, scratch_operands = 0 : i64, tpu.core_type = #tpu.core_type<tc>, window_params = [{transform_indices = @transform_0, window_bounds = array<i64: 8, 128>}, {transform_indices = @transform_1, window_bounds = array<i64: 8, 128>}, {pipeline_mode = #tpu.pipeline_mode<synchronous>, transform_indices = @transform_2, window_bounds = array<i64: 128, 128>}, {pipeline_mode = #tpu.pipeline_mode<synchronous>, transform_indices = @transform_3, window_bounds = array<i64: 128, 128>}, {pipeline_mode = #tpu.pipeline_mode<synchronous>, transform_indices = @transform_4, window_bounds = array<i64: 1, 128>}, {transform_indices = @transform_5, window_bounds = array<i64: 8, 128>}]} {
    %c0 = arith.constant 0 : index
    %c0_0 = arith.constant 0 : index
    %0 = vector.load %arg1[%c0, %c0_0] : memref<8x128xf32, #tpu.memory_space<vmem>>, vector<8x128xf32>
    %c0_1 = arith.constant 0 : index
    %c0_2 = arith.constant 0 : index
    %1 = vector.load %arg2[%c0_1, %c0_2] : memref<8x128xf32, #tpu.memory_space<vmem>>, vector<8x128xf32>
    %c0_3 = arith.constant 0 : index
    %c0_4 = arith.constant 0 : index
    %2 = vector.load %arg3[%c0_3, %c0_4] : memref<128x128xf32, #tpu.memory_space<vmem>>, vector<128x128xf32>
    %cst = arith.constant dense<0.000000e+00> : vector<8x128xf32>
    %3 = tpu.matmul %0, %2, %cst {dimension_numbers = #tpu.dot_dimension_numbers<[1], [0], [0], [1], [0, 0, 1, 1], [], []>} : vector<8x128xf32>, vector<128x128xf32>, vector<8x128xf32> -> vector<8x128xf32>
    %c0_5 = arith.constant 0 : index
    %c0_6 = arith.constant 0 : index
    %4 = vector.load %arg4[%c0_5, %c0_6] : memref<128x128xf32, #tpu.memory_space<vmem>>, vector<128x128xf32>
    %cst_7 = arith.constant dense<0.000000e+00> : vector<8x128xf32>
    %5 = tpu.matmul %1, %4, %cst_7 {dimension_numbers = #tpu.dot_dimension_numbers<[1], [0], [0], [1], [0, 0, 1, 1], [], []>} : vector<8x128xf32>, vector<128x128xf32>, vector<8x128xf32> -> vector<8x128xf32>
    %6 = arith.addf %3, %5 : vector<8x128xf32>
    %c0_8 = arith.constant 0 : index
    %c0_9 = arith.constant 0 : index
    %7 = vector.load %arg5[%c0_8, %c0_9] : memref<1x128xf32, #tpu.memory_space<vmem>>, vector<1x128xf32>
    %8 = vector.broadcast %7 : vector<1x128xf32> to vector<8x128xf32>
    %9 = arith.addf %6, %8 : vector<8x128xf32>
    %10 = arith.negf %9 : vector<8x128xf32>
    %11 = math.exp %10 : vector<8x128xf32>
    %cst_10 = arith.constant 1.000000e+00 : f32
    %12 = vector.broadcast %cst_10 : f32 to vector<8x128xf32>
    %13 = arith.addf %12, %11 : vector<8x128xf32>
    %14 = arith.divf %12, %13 : vector<8x128xf32>
    %15 = arith.subf %0, %1 : vector<8x128xf32>
    %16 = arith.mulf %14, %15 : vector<8x128xf32>
    %17 = arith.addf %1, %16 : vector<8x128xf32>
    %c0_11 = arith.constant 0 : index
    %c0_12 = arith.constant 0 : index
    %18 = vector.load %arg6[%c0_11, %c0_12] : memref<8x128xf32, #tpu.memory_space<vmem>>, vector<8x128xf32>
    tpu.vector_store %arg6[%c0_11, %c0_12], %17 {strides = array<i32>} : memref<8x128xf32, #tpu.memory_space<vmem>>, vector<8x128xf32>,
    return
  }
  func.func @transform_0(%arg0: i32) -> (i32, i32) {
    %c0_i32 = arith.constant 0 : i32
    %c0_i32_0 = arith.constant 0 : i32
    return %arg0, %c0_i32 : i32, i32
  }
  func.func @transform_1(%arg0: i32) -> (i32, i32) {
    %c0_i32 = arith.constant 0 : i32
    %c0_i32_0 = arith.constant 0 : i32
    return %arg0, %c0_i32 : i32, i32
  }
  func.func @transform_2(%arg0: i32) -> (i32, i32) {
    %c0_i32 = arith.constant 0 : i32
    %c0_i32_0 = arith.constant 0 : i32
    %c0_i32_1 = arith.constant 0 : i32
    return %c0_i32, %c0_i32_0 : i32, i32
  }
  func.func @transform_3(%arg0: i32) -> (i32, i32) {
    %c0_i32 = arith.constant 0 : i32
    %c0_i32_0 = arith.constant 0 : i32
    %c0_i32_1 = arith.constant 0 : i32
    return %c0_i32, %c0_i32_0 : i32, i32
  }
  func.func @transform_4(%arg0: i32) -> (i32, i32) {
    %c0_i32 = arith.constant 0 : i32
    %c0_i32_0 = arith.constant 0 : i32
    %c0_i32_1 = arith.constant 0 : i32
    return %c0_i32, %c0_i32_0 : i32, i32
  }
  func.func @transform_5(%arg0: i32) -> (i32, i32) {
    %c0_i32 = arith.constant 0 : i32
    %c0_i32_0 = arith.constant 0 : i32
    return %arg0, %c0_i32 : i32, i32
  }
}

</mosaic_0001>

<bundles_post_ra>
// kernel: tpu_custom_call.1
= control target key start
LH: loop header
LB: loop body
LE: loop exit
PB: predicated region body
PF: predicated region fallthrough
CT: control target
= control target key end

     0   :  { %10 = vsyncpa [#allocation3], 0  ;;  %s686_s0 = inlined_call_operand.hbm [shape: f32[8,128], index: 0, kind: input, shape index: {}]   ;;  %s687_s1 = inlined_call_operand.hbm [shape: f32[8,128], index: 1, kind: input, shape index: {}]   ;;  %s688_s2 = inlined_call_operand.hbm [shape: f32[128,128], index: 2, kind: input, shape index: {}]   ;;  %s689_s3 = inlined_call_operand.hbm [shape: f32[128,128], index: 3, kind: input, shape index: {}]   ;;  %s690_s4 = inlined_call_operand.vmem [shape: f32[1,128], index: 4, kind: input, shape index: {}]   ;;  %s691_s5 = inlined_call_operand.hbm [shape: f32[8,128], index: 5, kind: output, shape index: {}]  }
   0x1   :  { %11 = vsyncpa [#allocation6], 0 }
   0x2   :  { %12 = vsyncpa [#allocation9], 0 }
   0x3   :  { %13 = vsyncpa [#allocation4], 0  ;;  %s567_s18 = smov [#allocation5]   ;;  %s568_s20 = smov [#allocation2]  }
   0x4   :  { %s30_s19 = sshll.u32 %s567_s18, 4  ;;  %s20_s21 = sshll.u32 %s568_s20, 4  ;;  %s31_s19 = int_to_ptr.vmem [resolvable:$true] %s30_s19  ;;  %s21_s21 = int_to_ptr.vmem [resolvable:$true] %s20_s21 }
   0x5   :  { %s449_s24 = scalar_lea.hbm %s687_s1, 128 }
   0x6   :  { %p450_p0 = scmp.ne.s32.totalorder %s687_s1, %s449_s24  ;;  %p453_p1 = scmp.lt.u32.totalorder %s449_s24, %s687_s1 }
   0x8   :  { %p455_p2 = pnand %p453_p1, %p450_p0 }
   0xa   :  { %458 = shalt.err (!%p455_p2)
}
   0xb   :  { %s459_s29 = scalar_lea.vmem %s31_s19, 128  ;;  %p464_p4 = scmp.lt.s32.totalorder %s31_s19, %s31_s19 }
   0xc   :  { %p460_p3 = scmp.ne.s32.totalorder %s31_s19, %s459_s29  ;;  %p465_p5 = scmp.lt.s32.totalorder %s459_s29, %s459_s29 }
   0xe   :  { %p466_p6 = por %p465_p5, %p464_p4 }
  0x10   :  { %p467_p7 = pnand %p466_p6, %p460_p3 }
  0x12   :  { %470 = shalt.err (!%p467_p7)
}
  0x13   :  { %33 = dma.hbm_to_vmem [thread:$0]  %s687_s1, 128, %s31_s19, [#allocation6]  }
  0x14   :  { %s471_s9 = scalar_lea.hbm %s686_s0, 128 }
  0x15   :  { %p472_p8 = scmp.ne.s32.totalorder %s686_s0, %s471_s9  ;;  %p475_p9 = scmp.lt.u32.totalorder %s471_s9, %s686_s0 }
  0x17   :  { %p477_p10 = pnand %p475_p9, %p472_p8 }
  0x19   :  { %480 = shalt.err (!%p477_p10)
}
  0x1a   :  { %s481_s14 = scalar_lea.vmem %s21_s21, 128  ;;  %p486_p12 = scmp.lt.s32.totalorder %s21_s21, %s21_s21 }
  0x1b   :  { %p482_p11 = scmp.ne.s32.totalorder %s21_s21, %s481_s14  ;;  %p487_p13 = scmp.lt.s32.totalorder %s481_s14, %s481_s14 }
  0x1d   :  { %p488_p0 = por %p487_p13, %p486_p12 }
  0x1f   :  { %p489_p1 = pnand %p488_p0, %p482_p11 }
  0x21   :  { %492 = shalt.err (!%p489_p1)
}
  0x22   :  { %23 = dma.hbm_to_vmem [thread:$0]  %s686_s0, 128, %s21_s21, [#allocation3]  }
  0x23   :  { %s569_s16 = smov [#allocation7]   ;;  %s493_s20 = scalar_lea.hbm %s688_s2, 2048 }
  0x24   :  { %s39_s17 = sshll.u32 %s569_s16, 4  ;;  %p494_p2 = scmp.ne.s32.totalorder %s688_s2, %s493_s20  ;;  %s40_s17 = int_to_ptr.vmem [resolvable:$true] %s39_s17 }
  0x25   :  { %p497_p3 = scmp.lt.u32.totalorder %s493_s20, %s688_s2 }
  0x27   :  { %p499_p4 = pnand %p497_p3, %p494_p2 }
  0x29   :  { %502 = shalt.err (!%p499_p4)
}
  0x2a   :  { %s503_s26 = scalar_lea.vmem %s40_s17, 2048  ;;  %p508_p6 = scmp.lt.s32.totalorder %s40_s17, %s40_s17 }
  0x2b   :  { %p504_p5 = scmp.ne.s32.totalorder %s40_s17, %s503_s26  ;;  %p509_p7 = scmp.lt.s32.totalorder %s503_s26, %s503_s26 }
  0x2d   :  { %p510_p8 = por %p509_p7, %p508_p6 }
  0x2f   :  { %p511_p9 = pnand %p510_p8, %p504_p5 }
  0x31   :  { %514 = shalt.err (!%p511_p9)
}
  0x32   :  { %s570_s0 = smov 128   ;;  %s571_s21 = smov 8  }
  0x33   :  { %45 = dma.hbm_to_vmem [thread:$0]  %s688_s2, 2048, %s40_s17, [#allocation6], %s570_s0, %s570_s0, %s571_s21  }
  0x34   :  { %s572_s29 = smov [#allocation8]   ;;  %s515_s8 = scalar_lea.hbm %s689_s3, 2048 }
  0x35   :  { %s51_s30 = sshll.u32 %s572_s29, 4  ;;  %p516_p10 = scmp.ne.s32.totalorder %s689_s3, %s515_s8  ;;  %s52_s30 = int_to_ptr.vmem [resolvable:$true] %s51_s30 }
  0x36   :  { %p519_p11 = scmp.lt.u32.totalorder %s515_s8, %s689_s3 }
  0x38   :  { %p521_p12 = pnand %p519_p11, %p516_p10 }
  0x3a   :  { %524 = shalt.err (!%p521_p12)
}
  0x3b   :  { %s525_s13 = scalar_lea.vmem %s52_s30, 2048  ;;  %p530_p0 = scmp.lt.s32.totalorder %s52_s30, %s52_s30 }
  0x3c   :  { %p526_p13 = scmp.ne.s32.totalorder %s52_s30, %s525_s13  ;;  %p531_p1 = scmp.lt.s32.totalorder %s525_s13, %s525_s13 }
  0x3e   :  { %p532_p2 = por %p531_p1, %p530_p0 }
  0x40   :  { %p533_p3 = pnand %p532_p2, %p526_p13 }
  0x42   :  { %536 = shalt.err (!%p533_p3)
}
  0x43   :  { %57 = dma.hbm_to_vmem [thread:$0]  %s689_s3, 2048, %s52_s30, [#allocation9], %s570_s0, %s570_s0, %s571_s21  }
  0x44   :  { %559 = dma.done.wait [#allocation3], 128  }
  0x45   :  { %560 = vsyncadd [#allocation3], 4294967168 }
  0x46   :  { %561 = dma.done.wait [#allocation6], 2176  }
  0x47   :  { %562 = vsyncadd [#allocation6], 4294965120 }
  0x48   :  { %563 = dma.done.wait [#allocation9], 2048  }
  0x49   :  { %564 = vsyncadd [#allocation9], 4294965248  ;;  %v573_v0 = vmov 0.0|0.0   ;;  %vm574_vm0 = vmmov 0   ;;  %v575_v1 = vmov 0.0   ;;  %v90_v2 = vld [vmem:[#allocation8] sm:$0xff] }
  0x4a   :  { %387 = vmatprep.subr.bf16.mxu0 %v573_v0  ;;  %411 = vmatprep.subr.bf16.mxu1 %v573_v0  ;;  %v91_v3 = vld [vmem:[#allocation8 + $0x8] sm:$0xff]  ;;  %v74_v4 = vld [vmem:[#allocation7] sm:$0xff]  ;;  %v92_v7 = vld [vmem:[#allocation8 + $0x10] sm:$0xff]  ;;  %s576_s15 = smov [#allocation10]  }
  0x4b   :  { %349 = vmatprep.mubr.msk.f32.mxu0 %vm574_vm0, %v575_v1  ;;  %384 = vmatprep.mubr.msk.f32.mxu1 %vm574_vm0, %v575_v1  ;;  %v388_v5 = vpack.c.bf16 %v91_v3, %v90_v2  ;;  %v75_v6 = vld [vmem:[#allocation7 + $0x8] sm:$0xff]  ;;  %v93_v8 = vld [vmem:[#allocation8 + $0x18] sm:$0xff]  ;;  %v76_v10 = vld [vmem:[#allocation7 + $0x10] sm:$0xff]  ;;  %s270_s16 = sshll.u32 %s576_s15, 4  ;;  %s271_s16 = int_to_ptr.vmem [resolvable:$true] %s270_s16 }
  0x4c   :  { %v412_v9 = vpack.c.bf16 %v75_v6, %v74_v4  ;;  %v77_v11 = vld [vmem:[#allocation7 + $0x18] sm:$0xff]  ;;  %v391_v12 = vpack.c.bf16 %v93_v8, %v92_v7  ;;  %v94_v14 = vld [vmem:[#allocation8 + $0x20] sm:$0xff]  ;;  %v95_v15 = vld [vmem:[#allocation8 + $0x28] sm:$0xff]  ;;  %s537_s17 = scalar_lea.vmem %s271_s16, 128  ;;  %p542_p5 = scmp.lt.s32.totalorder %s271_s16, %s271_s16 }
  0x4d   :  { %389 = vmatpush3.bf16.msra.mxu0 %v388_v5  ;;  %v415_v13 = vpack.c.bf16 %v77_v11, %v76_v10  ;;  %v78_v16 = vld [vmem:[#allocation7 + $0x20] sm:$0xff]  ;;  %v79_v17 = vld [vmem:[#allocation7 + $0x28] sm:$0xff]  ;;  %v394_v18 = vpack.c.bf16 %v95_v15, %v94_v14  ;;  %v96_v20 = vld [vmem:[#allocation8 + $0x30] sm:$0xff]  ;;  %p538_p4 = scmp.ne.s32.totalorder %s271_s16, %s537_s17  ;;  %p543_p6 = scmp.lt.s32.totalorder %s537_s17, %s537_s17 }
  0x4e   :  { %413 = vmatpush3.bf16.msra.mxu1 %v412_v9  ;;  %390 = vmatprep.subr.bf16.mxu0 %v573_v0  ;;  %v418_v19 = vpack.c.bf16 %v79_v17, %v78_v16  ;;  %v97_v21 = vld [vmem:[#allocation8 + $0x38] sm:$0xff]  ;;  %v80_v22 = vld [vmem:[#allocation7 + $0x30] sm:$0xff]  ;;  %v98_v26 = vld [vmem:[#allocation8 + $0x40] sm:$0xff] }
  0x4f   :  { %414 = vmatprep.subr.bf16.mxu1 %v573_v0  ;;  %v81_v23 = vld [vmem:[#allocation7 + $0x38] sm:$0xff]  ;;  %v397_v24 = vpack.c.bf16 %v97_v21, %v96_v20  ;;  %v99_v27 = vld [vmem:[#allocation8 + $0x48] sm:$0xff]  ;;  %v82_v28 = vld [vmem:[#allocation7 + $0x40] sm:$0xff]  ;;  %p544_p7 = por %p543_p6, %p542_p5 }
  0x50   :  { %v421_v25 = vpack.c.bf16 %v81_v23, %v80_v22  ;;  %v83_v29 = vld [vmem:[#allocation7 + $0x48] sm:$0xff]  ;;  %v400_v30 = vpack.c.bf16 %v99_v27, %v98_v26  ;;  %v100_v32 = vld [vmem:[#allocation8 + $0x50] sm:$0xff]  ;;  %v101_v33 = vld [vmem:[#allocation8 + $0x58] sm:$0xff] }
  0x51   :  { %392 = vmatpush3.bf16.msra.mxu0 %v391_v12  ;;  %v424_v31 = vpack.c.bf16 %v83_v29, %v82_v28  ;;  %v84_v34 = vld [vmem:[#allocation7 + $0x50] sm:$0xff]  ;;  %v85_v35 = vld [vmem:[#allocation7 + $0x58] sm:$0xff]  ;;  %v403_v36 = vpack.c.bf16 %v101_v33, %v100_v32  ;;  %v102_v38 = vld [vmem:[#allocation8 + $0x60] sm:$0xff]  ;;  %p545_p8 = pnand %p544_p7, %p538_p4 }
  0x52   :  { %416 = vmatpush3.bf16.msra.mxu1 %v415_v13  ;;  %393 = vmatprep.subr.bf16.mxu0 %v573_v0  ;;  %v427_v37 = vpack.c.bf16 %v85_v35, %v84_v34  ;;  %v103_v39 = vld [vmem:[#allocation8 + $0x68] sm:$0xff]  ;;  %v86_v40 = vld [vmem:[#allocation7 + $0x60] sm:$0xff]  ;;  %v104_v44 = vld [vmem:[#allocation8 + $0x70] sm:$0xff] }
  0x53   :  { %417 = vmatprep.subr.bf16.mxu1 %v573_v0  ;;  %v87_v41 = vld [vmem:[#allocation7 + $0x68] sm:$0xff]  ;;  %v406_v42 = vpack.c.bf16 %v103_v39, %v102_v38  ;;  %v105_v45 = vld [vmem:[#allocation8 + $0x78] sm:$0xff]  ;;  %v88_v46 = vld [vmem:[#allocation7 + $0x70] sm:$0xff] }
  0x54   :  { %v430_v43 = vpack.c.bf16 %v87_v41, %v86_v40  ;;  %v89_v47 = vld [vmem:[#allocation7 + $0x78] sm:$0xff]  ;;  %v409_v48 = vpack.c.bf16 %v105_v45, %v104_v44  ;;  %v72_v51 = vld [vmem:[#allocation2] sm:$0xff] }
  0x55   :  { %395 = vmatpush3.bf16.msra.mxu0 %v394_v18  ;;  %v433_v49 = vpack.c.bf16 %v89_v47, %v88_v46  ;;  %v73_v50 = vld [vmem:[#allocation5] sm:$0xff]  ;;  %v281_v54 = vld [vmem:[%s690_s4] ss:$0 sm:$0xff] }
  0x56   :  { %419 = vmatpush3.bf16.msra.mxu1 %v418_v19  ;;  %396 = vmatprep.subr.bf16.mxu0 %v573_v0  ;;  %v260_v62 = vsub.f32 %v72_v51, %v73_v50 }
  0x57   :  { %420 = vmatprep.subr.bf16.mxu1 %v573_v0 }
  0x59   :  { %398 = vmatpush3.bf16.msra.mxu0 %v397_v24 }
  0x5a   :  { %422 = vmatpush3.bf16.msra.mxu1 %v421_v25  ;;  %399 = vmatprep.subr.bf16.mxu0 %v573_v0 }
  0x5b   :  { %423 = vmatprep.subr.bf16.mxu1 %v573_v0 }
  0x5d   :  { %401 = vmatpush3.bf16.msra.mxu0 %v400_v30 }
  0x5e   :  { %425 = vmatpush3.bf16.msra.mxu1 %v424_v31  ;;  %402 = vmatprep.subr.bf16.mxu0 %v573_v0 }
  0x5f   :  { %426 = vmatprep.subr.bf16.mxu1 %v573_v0 }
  0x61   :  { %404 = vmatpush3.bf16.msra.mxu0 %v403_v36 }
  0x62   :  { %428 = vmatpush3.bf16.msra.mxu1 %v427_v37  ;;  %405 = vmatprep.subr.bf16.mxu0 %v573_v0 }
  0x63   :  { %429 = vmatprep.subr.bf16.mxu1 %v573_v0 }
  0x65   :  { %407 = vmatpush3.bf16.msra.mxu0 %v406_v42 }
  0x66   :  { %431 = vmatpush3.bf16.msra.mxu1 %v430_v43  ;;  %408 = vmatprep.subr.bf16.mxu0 %v573_v0 }
  0x67   :  { %432 = vmatprep.subr.bf16.mxu1 %v573_v0 }
  0x69   :  { %410 = vmatpush3.bf16.msra.mxu0 %v409_v48 }
  0x6a   :  { %434 = vmatpush3.bf16.msra.mxu1 %v433_v49 }
  0x6c   :  { %350 = vmatmul.mubr.f32.vlgmr.msra.gmra.mrb[0].mxu0 %v73_v50 }
  0x6d   :  { %385 = vmatmul.mubr.f32.vlgmr.msra.gmra.mrb[0].mxu1 %v72_v51 }
 0x13f   :  { %v172_v52 = vpop.f32.mrb[0].mxu0 }
 0x140   :  { %v242_v53 = vpop.f32.mrb[0].mxu1  ;;  %v351_v55 = vpop.f32.mrb[1].mxu0 }
 0x141   :  { %v243_v56 = vadd.f32 %v242_v53, %v172_v52  ;;  %v386_v57 = vpop.f32.mrb[1].mxu1 }
 0x143   :  { %v253_v58 = vadd.f32 %v281_v54, %v243_v56 }
 0x145   :  { %v282_v59 = vmul.f32 -1.442695, %v253_v58 }
 0x147   :  { %445 = vpow2.f32 %v282_v59 }
 0x151   :  { %v446_v60 = vpop.eup %445 }
 0x152   :  { %v257_v61 = vadd.f32 1.0, %v446_v60 }
 0x154   :  { %447 = vrcp.f32 %v257_v61 }
 0x15e   :  { %v448_v63 = vpop.eup %447 }
 0x15f   :  { %v261_v0 = vmul.f32 %v448_v63, %v260_v62 }
 0x161   :  { %v262_v1 = vadd.f32 %v261_v0, %v73_v50 }
 0x163   :  { %263 = vst [vmem:[#allocation10] sm:$0xff] %v262_v1 }
 0x164   :  { %548 = shalt.err (!%p545_p8)
}
 0x165   :  { %s549_s19 = scalar_lea.hbm %s691_s5, 128 }
 0x166   :  { %p550_p9 = scmp.ne.s32.totalorder %s691_s5, %s549_s19  ;;  %p553_p10 = scmp.lt.u32.totalorder %s549_s19, %s691_s5 }
 0x168   :  { %p555_p11 = pnand %p553_p10, %p550_p9 }
 0x16a   :  { %558 = shalt.err (!%p555_p11)
}
 0x16b   :  { %273 = dma.vmem_to_hbm [thread:$0]  %s271_s16, 128, %s691_s5, [#allocation4]  }
 0x16c   :  { %565 = dma.done.wait [#allocation4], 128  }
 0x16d   :  { %566 = vsyncadd [#allocation4], 4294967168 }
 0x16e   :  { %277 = vsyncpa [#allocation3], 1 }
 0x16f   :  { %278 = vsyncpa [#allocation6], 1 }
 0x170   :  { %279 = vsyncpa [#allocation9], 1 }
 0x171   :  { %280 = vsyncpa [#allocation4], 1 }

</bundles_post_ra>
